<compile_context>
chip_gen: v7x
topology: tpu7x:2x2x1
jax: 0.10.0
libtpu: 0.0.40
codegen_flags: <defaults>
</compile_context>

<pallas_src>
import jax
import jax.numpy as jnp
from jax.experimental import pallas as pl
from jax.experimental.pallas import tpu as pltpu


def _round_up(v, m):
    return (v + m - 1) // m * m


def _vmem_budget_bytes():
    # Per-TensorCore VMEM differs by generation (128 MiB v5e/v6e, 64 MiB v7x);
    # query it instead of hard-coding, and keep ~25% headroom for the compiler.
    try:
        return int(pltpu.get_tpu_info().vmem_capacity_bytes) * 3 // 4
    except Exception:
        return 48 << 20  # conservative fallback sized for v7x


# ------------------------------- Pallas kernel ------------------------------- #
def _fused_gcn_kernel(a_ref, dinv_ref, x_ref, wt_ref, b_ref, o_ref, h_ref, acc_ref):
    # a_ref   : (TM, TK)          int8  edge-count tile of A (with self loops)
    # dinv_ref: (TM, 1)           f32   1/deg for this row tile (0 on padded rows)
    # x_ref   : (N_pad, IN_pad)   bf16  node features (resident; used at step 0)
    # wt_ref  : (IN_pad, F_pad)   bf16  W^T (resident)
    # b_ref   : (1, F_pad)        f32   bias (resident)
    # o_ref   : (TM, F_pad)       f32   output row tile (final hop's write wins)
    # h_ref   : (2, N_pad, F_pad) bf16  VMEM ping/pong H buffers (persist over grid)
    # acc_ref : (TM, F_pad)       f32   K-reduction accumulator
    hop = pl.program_id(0)
    i = pl.program_id(1)
    k = pl.program_id(2)
    tm, tk = a_ref.shape

    # Fused linear at the very first grid step: H0 = X @ W^T + b into ping buffer.
    @pl.when((hop == 0) & (i == 0) & (k == 0))
    def _():
        h0 = jnp.dot(x_ref[...], wt_ref[...], preferred_element_type=jnp.float32)
        h0 = h0 + b_ref[...]
        h_ref[0, :, :] = h0.astype(h_ref.dtype)

    @pl.when(k == 0)
    def _():
        acc_ref[...] = jnp.zeros_like(acc_ref)

    # Stream an int8 count tile, upconvert on the VPU (hidden under the DMA),
    # and multiply against the previous hop's H slice held resident in VMEM.
    a_tile = a_ref[...].astype(jnp.float32).astype(jnp.bfloat16)
    k_start = pl.multiple_of(k * tk, tk)
    h_prev = h_ref[hop % 2, pl.ds(k_start, tk), :]
    acc_ref[...] += jnp.dot(a_tile, h_prev, preferred_element_type=jnp.float32)

    @pl.when(k == pl.num_programs(2) - 1)
    def _():
        # Exact scatter-mean: integer counts summed in f32, scaled by f32 1/deg.
        new_rows = acc_ref[...] * dinv_ref[...]
        i_start = pl.multiple_of(i * tm, tm)
        h_ref[(hop + 1) % 2, pl.ds(i_start, tm), :] = new_rows.astype(h_ref.dtype)
        o_ref[...] = new_rows  # flushed per hop; the final hop overwrites in HBM


# ------------------------------ pallas_call wrapper -------------------------- #
def decoupled_gcn_pallas(x, w, b, counts, *, num_propagations=2, tile=512):
    """DecoupledGCN forward.

    x      : (N, in_dim) f32 node features
    w, b   : Linear params, w (out_dim, in_dim), b (out_dim,)
    counts : (N, N) f32 integer edge counts WITH self loops:
             counts[i, j] = #edges with dst == i (edge_index[0]) and
             src == j (edge_index[1]), +1 on the diagonal.
    """
    n, in_dim = x.shape
    out_dim = w.shape[0]
    hops = max(int(num_propagations), 1)  # the module always does >= 1 scatter

    # Lane/tile-friendly padding; tile_m == tile_k keeps padding minimal.
    tile = max(128, (int(tile) // 128) * 128)
    tile = min(tile, _round_up(n, 128))
    n_pad = _round_up(n, tile)
    in_pad = _round_up(in_dim, 128)
    f_pad = _round_up(out_dim, 128)
    n_tiles = n_pad // tile

    cdt = jnp.bfloat16
    xp = jnp.zeros((n_pad, in_pad), cdt).at[:n, :in_dim].set(x.astype(cdt))
    wtp = jnp.zeros((in_pad, f_pad), cdt).at[:in_dim, :out_dim].set(w.T.astype(cdt))
    bp = jnp.zeros((1, f_pad), jnp.float32).at[0, :out_dim].set(b.astype(jnp.float32))

    deg = counts.sum(axis=1)
    dinv = jnp.where(deg > 0, 1.0 / deg, 0.0).astype(jnp.float32)
    dinv_p = jnp.zeros((n_pad, 1), jnp.float32).at[:n, 0].set(dinv)  # padded rows -> 0

    # 8-bit edge counts: exact small integers, half the HBM bytes of bf16 P.
    a_p = jnp.zeros((n_pad, n_pad), jnp.int8).at[:n, :n].set(counts.astype(jnp.int8))

    est_vmem = (2 * tile * tile                # int8 A tiles (double-buffered)
                + 2 * tile * 4                 # 1/deg tiles
                + 2 * n_pad * in_pad * 2       # resident X
                + 2 * in_pad * f_pad * 2       # resident W^T
                + 2 * f_pad * 4                # bias
                + 2 * tile * f_pad * 4         # output tiles
                + 2 * n_pad * f_pad * 2        # H ping/pong scratch
                + tile * f_pad * 4)            # f32 accumulator
    vmem_limit = int(min(max(est_vmem * 5 // 4 + (4 << 20), 32 << 20),
                         _vmem_budget_bytes()))

    flops = 2 * n_pad * in_pad * f_pad + hops * 2 * n_pad * n_pad * f_pad
    bytes_accessed = (n_pad * in_pad * 2 + in_pad * f_pad * 2 + f_pad * 4
                      + n_pad * 4                 # x, W^T, b, 1/deg
                      + hops * n_pad * n_pad      # int8 A streamed once per hop
                      + hops * n_pad * f_pad * 4)  # per-hop output flushes

    out = pl.pallas_call(
        _fused_gcn_kernel,
        out_shape=jax.ShapeDtypeStruct((n_pad, f_pad), jnp.float32),
        grid_spec=pltpu.PrefetchScalarGridSpec(
            num_scalar_prefetch=0,
            grid=(hops, n_tiles, n_tiles),
            in_specs=[
                pl.BlockSpec((tile, tile), lambda h, i, k: (i, k)),      # A counts
                pl.BlockSpec((tile, 1), lambda h, i, k: (i, 0)),         # 1/deg
                pl.BlockSpec((n_pad, in_pad), lambda h, i, k: (0, 0)),   # X (resident)
                pl.BlockSpec((in_pad, f_pad), lambda h, i, k: (0, 0)),   # W^T (resident)
                pl.BlockSpec((1, f_pad), lambda h, i, k: (0, 0)),        # bias (resident)
            ],
            out_specs=pl.BlockSpec((tile, f_pad), lambda h, i, k: (i, 0)),
            scratch_shapes=[
                pltpu.VMEM((2, n_pad, f_pad), cdt),       # H ping/pong (resident)
                pltpu.VMEM((tile, f_pad), jnp.float32),   # K-reduction accumulator
            ],
        ),
        compiler_params=pltpu.CompilerParams(
            dimension_semantics=("arbitrary", "arbitrary", "arbitrary"),
            vmem_limit_bytes=vmem_limit),
        cost_estimate=pl.CostEstimate(
            flops=flops, transcendentals=0, bytes_accessed=bytes_accessed),
    )(a_p, dinv_p, xp, wtp, bp)

    return out[:n, :out_dim]


# ---------------------------------- JAX glue --------------------------------- #
def build_edge_counts(edge_index, num_nodes):
    """Dense integer adjacency counts with self loops.

    counts[i, j] = #edges with dst == i (edge_index[0]) and src == j
    (edge_index[1]), plus 1 on the diagonal (add_self_loops).  Matches
    scatter(x[edge_index[1]], edge_index[0], reduce='mean') normalization.
    """
    loops = jnp.arange(num_nodes, dtype=edge_index.dtype)
    dst = jnp.concatenate([edge_index[0], loops])
    src = jnp.concatenate([edge_index[1], loops])
    return jnp.zeros((num_nodes, num_nodes), jnp.float32).at[dst, src].add(1.0)


def reference_forward(x, edge_index, w, b, num_propagations):
    """Pure-JAX gather/scatter reference mirroring the PyTorch module (f32)."""
    h = x @ w.T + b
    n = x.shape[0]
    loops = jnp.arange(n, dtype=edge_index.dtype)
    dst = jnp.concatenate([edge_index[0], loops])
    src = jnp.concatenate([edge_index[1], loops])
    ones = jnp.ones((dst.shape[0], 1), jnp.float32)
    cnt = jax.ops.segment_sum(ones, dst, num_segments=n)
    for _ in range(max(num_propagations, 1)):
        h = jax.ops.segment_sum(h[src], dst, num_segments=n) / cnt
    return h


# ------------------------------------ main ------------------------------------ #
if __name__ == "__main__":
    key = jax.random.PRNGKey(0)
    k_x, k_w, k_b, k_src, k_dst = jax.random.split(key, 5)

    # Small, module-consistent shapes (padded internally to 128-multiples).
    num_nodes = 200
    in_dim, hidden_dim, out_dim = 48, 64, 24   # hidden_dim unused (num_layers=1)
    num_propagations = 2
    num_edges = 800

    x = jax.random.normal(k_x, (num_nodes, in_dim), jnp.float32)
    # Deterministic synthetic Linear parameters (not a checkpoint).
    w = jax.random.normal(k_w, (out_dim, in_dim), jnp.float32) * 0.1
    b = jax.random.normal(k_b, (out_dim,), jnp.float32) * 0.1

    edge_index = jnp.stack([
        jax.random.randint(k_dst, (num_edges,), 0, num_nodes),  # row / dst
        jax.random.randint(k_src, (num_edges,), 0, num_nodes),  # col / src
    ]).astype(jnp.int32)

    counts = build_edge_counts(edge_index, num_nodes)

    # tile=128 here so the padded N=256 problem actually exercises the
    # (hops x row-tiles x K-tiles) grid, the VMEM H ping/pong, and the pl.when
    # init/finalize paths.  Production default is tile=512.
    out = decoupled_gcn_pallas(x, w, b, counts,
                               num_propagations=num_propagations, tile=128)
    out = jax.block_until_ready(out)

    ref = reference_forward(x, edge_index, w, b, num_propagations)
    assert out.shape == (num_nodes, out_dim)
    # bf16-streamed X/W/H with exact int8 counts + f32 1/deg normalization.
    assert jnp.allclose(out, ref, atol=3e-2, rtol=3e-2), "mismatch vs reference"

    print("KERNEL_OK")
</pallas_src>

<mosaic_0001>
module attributes {stable_mosaic.version = 11 : i64} {
  func.func @_fused_gcn_kernel(%arg0: i32, %arg1: i32, %arg2: i32, %arg3: memref<128x128xi8, #tpu.memory_space<vmem>>, %arg4: memref<128x1xf32, #tpu.memory_space<vmem>>, %arg5: memref<256x128xbf16, #tpu.memory_space<vmem>>, %arg6: memref<128x128xbf16, #tpu.memory_space<vmem>>, %arg7: memref<1x128xf32, #tpu.memory_space<vmem>>, %arg8: memref<128x128xf32, #tpu.memory_space<vmem>>, %arg9: memref<2x256x128xbf16, #tpu.memory_space<vmem>>, %arg10: memref<128x128xf32, #tpu.memory_space<vmem>>) attributes {dimension_semantics = [#tpu.dimension_semantics<arbitrary>, #tpu.dimension_semantics<arbitrary>, #tpu.dimension_semantics<arbitrary>], iteration_bounds = array<i64: 2, 2, 2>, scalar_prefetch = 0 : i64, scratch_operands = 2 : i64, tpu.core_type = #tpu.core_type<tc>, window_params = [{transform_indices = @transform_0, window_bounds = array<i64: 128, 128>}, {transform_indices = @transform_1, window_bounds = array<i64: 128, 1>}, {pipeline_mode = #tpu.pipeline_mode<synchronous>, transform_indices = @transform_2, window_bounds = array<i64: 256, 128>}, {pipeline_mode = #tpu.pipeline_mode<synchronous>, transform_indices = @transform_3, window_bounds = array<i64: 128, 128>}, {pipeline_mode = #tpu.pipeline_mode<synchronous>, transform_indices = @transform_4, window_bounds = array<i64: 1, 128>}, {transform_indices = @transform_5, window_bounds = array<i64: 128, 128>}]} {
    %c0_i32 = arith.constant 0 : i32
    %0 = arith.cmpi eq, %arg0, %c0_i32 : i32
    %c0_i32_0 = arith.constant 0 : i32
    %1 = arith.cmpi eq, %arg1, %c0_i32_0 : i32
    %2 = arith.andi %0, %1 : i1
    %c0_i32_1 = arith.constant 0 : i32
    %3 = arith.cmpi eq, %arg2, %c0_i32_1 : i32
    %4 = arith.andi %2, %3 : i1
    %5 = arith.extui %4 : i1 to i32
    %c0_i32_2 = arith.constant 0 : i32
    %6 = arith.cmpi ne, %5, %c0_i32_2 : i32
    scf.if %6 {
      %c0_17 = arith.constant 0 : index
      %c0_18 = arith.constant 0 : index
      %36 = vector.load %arg5[%c0_17, %c0_18] : memref<256x128xbf16, #tpu.memory_space<vmem>>, vector<256x128xbf16>
      %c0_19 = arith.constant 0 : index
      %c0_20 = arith.constant 0 : index
      %37 = vector.load %arg6[%c0_19, %c0_20] : memref<128x128xbf16, #tpu.memory_space<vmem>>, vector<128x128xbf16>
      %cst_21 = arith.constant dense<0.000000e+00> : vector<256x128xf32>
      %38 = tpu.matmul %36, %37, %cst_21 {dimension_numbers = #tpu.dot_dimension_numbers<[1], [0], [0], [1], [0, 0, 1, 1], [], []>} : vector<256x128xbf16>, vector<128x128xbf16>, vector<256x128xf32> -> vector<256x128xf32>
      %c0_22 = arith.constant 0 : index
      %c0_23 = arith.constant 0 : index
      %39 = vector.load %arg7[%c0_22, %c0_23] : memref<1x128xf32, #tpu.memory_space<vmem>>, vector<1x128xf32>
      %40 = vector.broadcast %39 : vector<1x128xf32> to vector<256x128xf32>
      %41 = arith.addf %38, %40 : vector<256x128xf32>
      %42 = arith.truncf %41 : vector<256x128xf32> to vector<256x128xbf16>
      %c0_24 = arith.constant 0 : index
      %c0_25 = arith.constant 0 : index
      %c0_26 = arith.constant 0 : index
      %43 = vector.load %arg9[%c0_24, %c0_25, %c0_26] : memref<2x256x128xbf16, #tpu.memory_space<vmem>>, vector<1x256x128xbf16>
      %44 = vector.shape_cast %43 : vector<1x256x128xbf16> to vector<256x128xbf16>
      %45 = vector.shape_cast %42 : vector<256x128xbf16> to vector<1x256x128xbf16>
      tpu.vector_store %arg9[%c0_24, %c0_25, %c0_26], %45 {strides = array<i32>} : memref<2x256x128xbf16, #tpu.memory_space<vmem>>, vector<1x256x128xbf16>,
    } else {
    }
    %c0_i32_3 = arith.constant 0 : i32
    %7 = arith.cmpi eq, %arg2, %c0_i32_3 : i32
    %8 = arith.extui %7 : i1 to i32
    %c0_i32_4 = arith.constant 0 : i32
    %9 = arith.cmpi ne, %8, %c0_i32_4 : i32
    scf.if %9 {
      %cst_17 = arith.constant 0.000000e+00 : f32
      %36 = vector.broadcast %cst_17 : f32 to vector<128x128xf32>
      %c0_18 = arith.constant 0 : index
      %c0_19 = arith.constant 0 : index
      %37 = vector.load %arg10[%c0_18, %c0_19] : memref<128x128xf32, #tpu.memory_space<vmem>>, vector<128x128xf32>
      tpu.vector_store %arg10[%c0_18, %c0_19], %36 {strides = array<i32>} : memref<128x128xf32, #tpu.memory_space<vmem>>, vector<128x128xf32>,
    } else {
    }
    %c0 = arith.constant 0 : index
    %c0_5 = arith.constant 0 : index
    %10 = vector.load %arg3[%c0, %c0_5] : memref<128x128xi8, #tpu.memory_space<vmem>>, vector<128x128xi8>
    %11 = arith.sitofp %10 : vector<128x128xi8> to vector<128x128xf32>
    %12 = arith.truncf %11 : vector<128x128xf32> to vector<128x128xbf16>
    %c128_i32 = arith.constant 128 : i32
    %13 = arith.muli %arg2, %c128_i32 : i32
    %14 = tpu.assume_multiple %13, 128 : i32
    %c2_i32 = arith.constant 2 : i32
    %c0_i32_6 = arith.constant 0 : i32
    %15 = arith.cmpi eq, %c2_i32, %c0_i32_6 : i32
    %c1_i32 = arith.constant 1 : i32
    %16 = arith.select %15, %c1_i32, %c2_i32 : i32
    %17 = arith.remsi %arg0, %16 : i32
    %c0_i32_7 = arith.constant 0 : i32
    %18 = arith.cmpi ne, %17, %c0_i32_7 : i32
    %c0_i32_8 = arith.constant 0 : i32
    %19 = arith.cmpi slt, %17, %c0_i32_8 : i32
    %c0_i32_9 = arith.constant 0 : i32
    %20 = arith.cmpi slt, %16, %c0_i32_9 : i32
    %21 = arith.xori %19, %20 : i1
    %22 = arith.andi %21, %18 : i1
    %23 = arith.addi %17, %16 : i32
    %24 = arith.select %22, %23, %17 : i32
    %25 = arith.index_cast %24 : i32 to index
    %26 = arith.index_cast %14 : i32 to index
    %c0_10 = arith.constant 0 : index
    %27 = vector.load %arg9[%25, %26, %c0_10] : memref<2x256x128xbf16, #tpu.memory_space<vmem>>, vector<1x128x128xbf16>
    %28 = vector.shape_cast %27 : vector<1x128x128xbf16> to vector<128x128xbf16>
    %c0_11 = arith.constant 0 : index
    %c0_12 = arith.constant 0 : index
    %29 = vector.load %arg10[%c0_11, %c0_12] : memref<128x128xf32, #tpu.memory_space<vmem>>, vector<128x128xf32>
    %cst = arith.constant dense<0.000000e+00> : vector<128x128xf32>
    %30 = tpu.matmul %12, %28, %cst {dimension_numbers = #tpu.dot_dimension_numbers<[1], [0], [0], [1], [0, 0, 1, 1], [], []>} : vector<128x128xbf16>, vector<128x128xbf16>, vector<128x128xf32> -> vector<128x128xf32>
    %31 = arith.addf %29, %30 : vector<128x128xf32>
    %c0_13 = arith.constant 0 : index
    %c0_14 = arith.constant 0 : index
    %32 = vector.load %arg10[%c0_13, %c0_14] : memref<128x128xf32, #tpu.memory_space<vmem>>, vector<128x128xf32>
    tpu.vector_store %arg10[%c0_13, %c0_14], %31 {strides = array<i32>} : memref<128x128xf32, #tpu.memory_space<vmem>>, vector<128x128xf32>,
    %c1_i32_15 = arith.constant 1 : i32
    %33 = arith.cmpi eq, %arg2, %c1_i32_15 : i32
    %34 = arith.extui %33 : i1 to i32
    %c0_i32_16 = arith.constant 0 : i32
    %35 = arith.cmpi ne, %34, %c0_i32_16 : i32
    scf.if %35 {
      %c0_17 = arith.constant 0 : index
      %c0_18 = arith.constant 0 : index
      %36 = vector.load %arg10[%c0_17, %c0_18] : memref<128x128xf32, #tpu.memory_space<vmem>>, vector<128x128xf32>
      %c0_19 = arith.constant 0 : index
      %c0_20 = arith.constant 0 : index
      %37 = vector.load %arg4[%c0_19, %c0_20] : memref<128x1xf32, #tpu.memory_space<vmem>>, vector<128x1xf32>
      %38 = vector.broadcast %37 : vector<128x1xf32> to vector<128x128xf32>
      %39 = arith.mulf %36, %38 : vector<128x128xf32>
      %c128_i32_21 = arith.constant 128 : i32
      %40 = arith.muli %arg1, %c128_i32_21 : i32
      %41 = tpu.assume_multiple %40, 128 : i32
      %42 = arith.truncf %39 : vector<128x128xf32> to vector<128x128xbf16>
      %c1_i32_22 = arith.constant 1 : i32
      %43 = arith.addi %arg0, %c1_i32_22 : i32
      %c2_i32_23 = arith.constant 2 : i32
      %c0_i32_24 = arith.constant 0 : i32
      %44 = arith.cmpi eq, %c2_i32_23, %c0_i32_24 : i32
      %c1_i32_25 = arith.constant 1 : i32
      %45 = arith.select %44, %c1_i32_25, %c2_i32_23 : i32
      %46 = arith.remsi %43, %45 : i32
      %c0_i32_26 = arith.constant 0 : i32
      %47 = arith.cmpi ne, %46, %c0_i32_26 : i32
      %c0_i32_27 = arith.constant 0 : i32
      %48 = arith.cmpi slt, %46, %c0_i32_27 : i32
      %c0_i32_28 = arith.constant 0 : i32
      %49 = arith.cmpi slt, %45, %c0_i32_28 : i32
      %50 = arith.xori %48, %49 : i1
      %51 = arith.andi %50, %47 : i1
      %52 = arith.addi %46, %45 : i32
      %53 = arith.select %51, %52, %46 : i32
      %54 = arith.index_cast %53 : i32 to index
      %55 = arith.index_cast %41 : i32 to index
      %c0_29 = arith.constant 0 : index
      %56 = vector.load %arg9[%54, %55, %c0_29] : memref<2x256x128xbf16, #tpu.memory_space<vmem>>, vector<1x128x128xbf16>
      %57 = vector.shape_cast %56 : vector<1x128x128xbf16> to vector<128x128xbf16>
      %58 = vector.shape_cast %42 : vector<128x128xbf16> to vector<1x128x128xbf16>
      tpu.vector_store %arg9[%54, %55, %c0_29], %58 {strides = array<i32>} : memref<2x256x128xbf16, #tpu.memory_space<vmem>>, vector<1x128x128xbf16>,
      %c0_30 = arith.constant 0 : index
      %c0_31 = arith.constant 0 : index
      %59 = vector.load %arg8[%c0_30, %c0_31] : memref<128x128xf32, #tpu.memory_space<vmem>>, vector<128x128xf32>
      tpu.vector_store %arg8[%c0_30, %c0_31], %39 {strides = array<i32>} : memref<128x128xf32, #tpu.memory_space<vmem>>, vector<128x128xf32>,
    } else {
    }
    return
  }
  func.func @transform_0(%arg0: i32, %arg1: i32, %arg2: i32) -> (i32, i32) {
    %c0_i32 = arith.constant 0 : i32
    return %arg1, %arg2 : i32, i32
  }
  func.func @transform_1(%arg0: i32, %arg1: i32, %arg2: i32) -> (i32, i32) {
    %c0_i32 = arith.constant 0 : i32
    %c0_i32_0 = arith.constant 0 : i32
    return %arg1, %c0_i32 : i32, i32
  }
  func.func @transform_2(%arg0: i32, %arg1: i32, %arg2: i32) -> (i32, i32) {
    %c0_i32 = arith.constant 0 : i32
    %c0_i32_0 = arith.constant 0 : i32
    %c0_i32_1 = arith.constant 0 : i32
    return %c0_i32, %c0_i32_0 : i32, i32
  }
  func.func @transform_3(%arg0: i32, %arg1: i32, %arg2: i32) -> (i32, i32) {
    %c0_i32 = arith.constant 0 : i32
    %c0_i32_0 = arith.constant 0 : i32
    %c0_i32_1 = arith.constant 0 : i32
    return %c0_i32, %c0_i32_0 : i32, i32
  }
  func.func @transform_4(%arg0: i32, %arg1: i32, %arg2: i32) -> (i32, i32) {
    %c0_i32 = arith.constant 0 : i32
    %c0_i32_0 = arith.constant 0 : i32
    %c0_i32_1 = arith.constant 0 : i32
    return %c0_i32, %c0_i32_0 : i32, i32
  }
  func.func @transform_5(%arg0: i32, %arg1: i32, %arg2: i32) -> (i32, i32) {
    %c0_i32 = arith.constant 0 : i32
    %c0_i32_0 = arith.constant 0 : i32
    return %arg1, %c0_i32 : i32, i32
  }
}

</mosaic_0001>

<bundles_post_ra>
// kernel: tpu_custom_call.1
= control target key start
LH: loop header
LB: loop body
LE: loop exit
PB: predicated region body
PF: predicated region fallthrough
CT: control target
= control target key end

     0   :  { %s2217_s0 = inlined_call_operand.vmem [shape: s8[256,256], index: 0, kind: input, shape index: {}]   ;;  %s2218_s1 = inlined_call_operand.vmem [shape: f32[256,1], index: 1, kind: input, shape index: {}]   ;;  %s2219_s2 = inlined_call_operand.vmem [shape: bf16[256,128], index: 2, kind: input, shape index: {}]   ;;  %s2220_s3 = inlined_call_operand.hbm [shape: bf16[128,128], index: 3, kind: input, shape index: {}]   ;;  %s2221_s4 = inlined_call_operand.vmem [shape: f32[1,128], index: 4, kind: input, shape index: {}]   ;;  %s2222_s5 = inlined_call_operand.hbm [shape: f32[256,128], index: 5, kind: output, shape index: {}]  }
   0x1   :  { %2235 = sst [smem:[#allocation20_spill]] %s2222_s5 }
   0x2   :  { %10 = vsyncpa [#allocation6], 0 }
   0x3   :  { %11 = vsyncpa [#allocation7], 0 }
   0x4   :  { %13 = vsyncpa [#allocation7 + $0x1], 0  ;;  %s1811_s18 = smov 0   ;;  %s1813_s19 = smov 0  }
   0x5   :  { %s1815_s20 = smov 0   ;;  %s1817_s21 = smov 0  }
   0x6   :  { %s1819_s22 = smov 0   ;;  %s1821_s23 = smov 0  }
   0x7   :  { %s1823_s24 = smov 0   ;;  %s1825_s25 = smov 0  }
   0x8   :  { %s1827_s26 = smov 0   ;;  %s1829_s27 = smov 0  }
   0x9   :  { %s1831_s28 = smov 0   ;;  %s1833_s29 = smov 0  }
   0xa LB: > { %2236 = sst [smem:[#allocation11_spill]] %s1727_s18  ;;  %s2224_s30 = sadd.s32 4294967295, %s1771_s29   ;;  %s1771_s29 = sphi %s1833_s29, %s19_s29   ;;  %s1767_s28 = sphi %s1831_s28, %s2275_s28   ;;  %s1763_s27 = sphi %s1829_s27, %s2274_s27   ;;  %s1759_s26 = sphi %s1827_s26, %s2273_s26   ;;  %s1755_s25 = sphi %s1825_s25, %s2263_s25   ;;  %s1751_s24 = sphi %s1823_s24, %s2272_s24   ;;  %s1747_s23 = sphi %s1821_s23, %s2271_s23   ;;  %s1743_s22 = sphi %s1819_s22, %s2270_s22   ;;  %s1739_s21 = sphi %s1817_s21, %s2269_s21   ;;  %s1735_s20 = sphi %s1815_s20, %s2261_s20   ;;  %s1731_s19 = sphi %s1813_s19, %s2268_s19   ;;  %s1727_s18 = sphi %s1811_s18, %s2267_s18  }
   0xb   : > { %2237 = sst [smem:[#allocation12_spill]] %s1735_s20  ;;  %s1255_s6 = sadd.s32 4294967294, %s1771_s29  }
   0xc   : > { %2238 = sst [smem:[#allocation13_spill]] %s1767_s28  ;;  %s31_s7 = sadd.s32 1, %s1759_s26 }
   0xd   : > { %s34_s8 = sadd.s32 1, %s1763_s27  ;;  %p32_p0 = scmp.ge.s32.totalorder %s31_s7, 2 }
   0xe   : > { %s38_s9 = sadd.s32 1, %s1767_s28  ;;  %s47_s10 = sadd.s32 1, %s1743_s22 }
   0xf   : > { %p54_p1 = scmp.ne.s32.totalorder %s1743_s22, %s1739_s21  ;;  %s2277_s7 = smov (%p32_p0, %s31_s7), 0 }
  0x10   : > { %2239 = sst [smem:[#allocation14_spill]] %s2277_s7  ;;  %s2279_s8 = smov (!%p32_p0, %s34_s8), %s1763_s27 }
  0x11   : > { %s43_s11 = ssub.s32 %s1759_s26, %s2277_s7  ;;  %p55_p2 = scmp.eq.s32.totalorder %s1771_s29, 0 }
  0x12   : > { %p36_p3 = scmp.ge.s32.totalorder %s2279_s8, 2  ;;  %s162_s12 = sadd.s32 1, %s1735_s20 }
  0x13   : > { %p1886_p4 = por %p55_p2, %p54_p1  ;;  %p172_p5 = scmp.ne.s32.totalorder %s1735_s20, %s1731_s19 }
  0x14   : > { %s2281_s8 = smov (%p36_p3, %s2279_s8), 0  ;;  %s2283_s9 = smov (!%p36_p3, %s38_s9), %s1767_s28 }
  0x15   : > { %s2240_s13 = scalar_select %p1886_p4, 1, 0 }
  0x16   : > { %2241 = sst [smem:[#allocation15_spill]] %s2281_s8  ;;  %s42_s14 = ssub.s32 %s1763_s27, %s2281_s8 }
  0x17   : > { %p173_p6 = scmp.eq.s32.totalorder %s2224_s30, 7  ;;  %p40_p7 = scmp.ge.s32.totalorder %s2283_s9, 2 }
  0x18   : > { %s44_s15 = sor.u32 %s43_s11, %s42_s14  ;;  %p160_p9 = scmp.eq.s32.totalorder %s42_s14, 0 }
  0x19   : > { %p45_p8 = scmp.eq.s32.totalorder %s44_s15, 0  ;;  %s2285_s9 = smov (%p40_p7, %s2283_s9), 0 }
  0x1a   : > { %2242 = sst [smem:[#allocation16_spill]] %s2285_s9  ;;  %p1907_p10 = por %p173_p6, %p172_p5 }
  0x1b   : > { %s1902_s16 = scalar_select %p45_p8, %s1743_s22, %s47_s10  }
  0x1c   : > { %s1905_s17 = scalar_select %p160_p9, %s1735_s20, %s162_s12  }
  0x1d   : > { %2243 = sst [smem:[#allocation17_spill]] %s1902_s16  ;;  %p178_p11 = scmp.ne.s32.totalorder %s1731_s19, %s1727_s18 }
  0x1e   : > { %2244 = sst [smem:[#allocation18_spill]] %s1905_s17  ;;  %p179_p12 = scmp.eq.s32.totalorder %s1255_s6, 7 }
  0x1f   : > { %s2245_s7 = scalar_select %p1907_p10, 1, 0 }
  0x20   : > { %p1256_p13 = scmp.ge.s32.totalorder %s1771_s29, 1  ;;  %p186_p0 = scmp.lt.s32.totalorder %s1771_s29, 9 }
  0x21   : > { %p1915_p1 = por %p179_p12, %p178_p11  ;;  %s2248_s11 = sadd.s32 4294967295, %s1771_s29  }
  0x22   : > { %p1921_p2 = scmp.eq.s32.totalorder %s2248_s11, 0  ;;  %p1925_p3 = pnand %p1256_p13, %p186_p0 }
  0x23   : > { %s2246_s30 = scalar_select %p1915_p1, 1, 0 }
  0x24   : > { %s2249_s14 = scalar_select %p1921_p2, 1, 0 }
  0x25   : > { %2247 = sst [smem:[#allocation19_spill]] %s2246_s30  ;;  %s1773_s12 = smov [#allocation5]  }
  0x26   : > { %s2250_s10 = scalar_select %p1925_p3, 1, 0 }
  0x27   : > { %s201_s15 = sshll.u32 %s1773_s12, 4  ;;  %p1473_p5 = pneg %p1925_p3  ;;  %s202_s15 = int_to_ptr.vmem [resolvable:$true] %s201_s15 }
  0x28   : > { %s1613_s8 = scalar_lea.hbm %s2220_s3, 1024 }
  0x29   : > { %p1933_p6 = pnand %p1921_p2, %p1473_p5  ;;  %p1614_p7 = scmp.ne.s32.totalorder %s2220_s3, %s1613_s8 }
  0x2a   : > { %p1620_p12 = scmp.lt.u32.totalorder %s1613_s8, %s2220_s3 }
  0x2b   : > { %p1615_p8 = pneg %p1933_p6 }
  0x2d   : > { %p1616_p9 = pnand %p1615_p8, %p1614_p7 }
  0x2f   : > { %p1617_p11 = pneg %p1616_p9 }
  0x31   : > { %p1622_p13 = pnand %p1620_p12, %p1617_p11 }
  0x33   : > { %1625 = shalt.err (!%p1622_p13)
}
  0x34   : > { %s1626_s20 = scalar_lea.vmem %s202_s15, 1024  ;;  %p1634_p10 = scmp.lt.s32.totalorder %s202_s15, %s202_s15 }
  0x35   : > { %p1627_p0 = scmp.ne.s32.totalorder %s202_s15, %s1626_s20  ;;  %p1635_p2 = scmp.lt.s32.totalorder %s1626_s20, %s1626_s20 }
  0x37   : > { %p1629_p5 = pnand %p1627_p0, %p1615_p8  ;;  %p1636_p3 = por %p1635_p2, %p1634_p10 }
  0x39   : > { %p1630_p1 = pneg %p1629_p5 }
  0x3b   : > { %p1637_p4 = pnand %p1636_p3, %p1630_p1 }
  0x3d   : > { %1640 = shalt.err (!%p1637_p4)
}
  0x3e   : > { %s1774_s28 = smov 64   ;;  %s1775_s9 = smov 4  }
  0x3f   : > { %1476 = dma.hbm_to_vmem [thread:$0]  (!%p1933_p6), %s2220_s3, 1024, %s202_s15, [#allocation6], %s1774_s28, %s1774_s28, %s1775_s9  }
  0x40   : > { %p1258_p7 = scmp.ge.s32.totalorder %s1771_s29, 8 }
  0x41   : > { %p2252_p9 = scmp.ne.s32.totalorder (!%p1258_p7), %s2240_s13, 0 }
  0x42   : > { %214 = sbr.rel (%p1258_p7) target bundleno = 81 (0x51), region = 28 }
  0x49   : > { %217 = sbr.rel (!%p2252_p9) target bundleno = 81 (0x51), region = 32  ;;  %s219_s20 = sand.u32 (%p2252_p9), 1, %s1743_s22  }
  0x4a   : > { %s1313_s8 = sshll.u32 (%p2252_p9), %s1763_s27, 3  ;;  %s1259_s17 = sshll.u32 (%p2252_p9), %s219_s20, 5 }
  0x4b   : > { %s224_s12 = sadd.s32 (%p2252_p9), %s1759_s26, %s1313_s8  ;;  %s221_s15 = scalar_lea.vmem (%p2252_p9), [#allocation4], %s1259_s17 }
  0x4c   : > { %s1262_s30 = sshll.u32 (%p2252_p9), %s224_s12, 3 }
  0x4d   : > { %s226_s5 = scalar_lea.vmem (%p2252_p9), %s2217_s0, %s1262_s30 }
  0x4e   : > { %v260_v0 = vld [vmem:[%s226_s5] sm:$0xff] (%p2252_p9)  ;;  %v262_v1 = vld [vmem:[%s226_s5 + $0x10] sm:$0xff] (%p2252_p9) }
  0x4f   : > { %v264_v2 = vld [vmem:[%s226_s5 + $0x20] sm:$0xff] (%p2252_p9)  ;;  %261 = vst [vmem:[%s221_s15] sm:$0xff] (%p2252_p9), %v260_v0  ;;  %263 = vst [vmem:[%s221_s15 + $0x8] sm:$0xff] (%p2252_p9), %v262_v1  ;;  %v266_v3 = vld [vmem:[%s226_s5 + $0x30] sm:$0xff] (%p2252_p9) }
  0x50   : > { %265 = vst [vmem:[%s221_s15 + $0x10] sm:$0xff] %v264_v2  ;;  %267 = vst [vmem:[%s221_s15 + $0x18] sm:$0xff] %v266_v3 }
  0x51 PF: > { %p2253_p4 = scmp.ne.s32.totalorder %s2250_s10, 0 }
  0x52   : > { %s288_s13 = sand.u32 (!%p2253_p4), 1, %s1739_s21   ;;  %p2254_p10 = scmp.ne.s32.totalorder (!%p2253_p4), %s2249_s14, 0 }
  0x53   : > { %285 = sbr.rel (%p2253_p4) target bundleno = 805 (0x325), region = 74  ;;  %s1264_s28 = sshll.u32 (!%p2253_p4), %s288_s13, 5 }
  0x54   : > { %s1965_s18 = scalar_lea.vmem (!%p2253_p4), [#allocation4], %s1264_s28 }
  0x5a   : > { %1718 = dma.done.wait (%p2254_p10), [#allocation6], 1024  }
  0x5b   : > { %1720 = vsyncadd (%p2254_p10), [#allocation6], 4294966272  ;;  %s321_s5 = sand.u32 1, %s1731_s19   ;;  %s1267_s30 = sshll.u32 %s1751_s24, 4 }
  0x5c   : > { %s1266_s10 = sshll.u32 %s321_s5, 7  ;;  %p326_p1 = scmp.lt.s32.totalorder %s1267_s30, 31 }
  0x5d   : > { %p333_p2 = scmp.eq.s32.totalorder %s1755_s25, 0  ;;  %p334_p3 = scmp.eq.s32.totalorder %s1751_s24, 0 }
  0x5e   : > { %s2287_s30 = smov (!%p326_p1, %s1267_s30), 31  ;;  %p337_p6 = scmp.eq.s32.totalorder %s1747_s23, 0 }
  0x5f   : > { %s1268_s21 = sshll.u32 %s2287_s30, 3  ;;  %p335_p8 = pnand %p334_p3, %p333_p2 }
  0x60   : > { %s1981_s14 = scalar_lea.vmem %s2218_s1, %s1268_s21  ;;  %s1983_s11 = scalar_lea.vmem [#allocation8], %s1266_s10 }
  0x61   : > { %p336_p11 = pneg %p335_p8 }
  0x63   : > { %p338_p12 = pnand %p337_p6, %p336_p11 }
  0x64   : > { %v1587_v4 = vld [vmem:[#allocation5] sm:$0xff] (!%p338_p12)   ;;  %v1588_v5 = vld [vmem:[#allocation5 + $0x8] sm:$0xff] (!%p338_p12)   ;;  %v1589_v6 = vld [vmem:[#allocation5 + $0x10] sm:$0xff] (!%p338_p12)  }
  0x65   : > { %341 = sbr.rel (%p338_p12) target bundleno = 377 (0x179), region = 86  ;;  %1355 = vmatprep.subr.bf16.mxu0 (!%p338_p12), %v1587_v4  ;;  %1435 = vmatprep.subr.bf16.mxu1 (!%p338_p12), %v1587_v4  ;;  %v1590_v7 = vld [vmem:[#allocation5 + $0x18] sm:$0xff] (!%p338_p12)   ;;  %v1595_v8 = vld [vmem:[%s2219_s2] sm:$0xff] (!%p338_p12)   ;;  %v1592_v11 = vld [vmem:[#allocation5 + $0x28] sm:$0xff] (!%p338_p12)  }
  0x66   : > { %1356 = vmatpush3.bf16.msra.mxu0 (!%p338_p12), %v1587_v4  ;;  %1443 = vmatpush3.bf16.msra.mxu1 (!%p338_p12), %v1587_v4  ;;  %v1596_v9 = vld [vmem:[%s2219_s2 + $0x40] sm:$0xff] (!%p338_p12)   ;;  %v1593_v12 = vld [vmem:[#allocation5 + $0x30] sm:$0xff] (!%p338_p12)   ;;  %v1594_v13 = vld [vmem:[#allocation5 + $0x38] sm:$0xff] (!%p338_p12)  }
  0x67   : > { %1357 = vmatprep.subr.bf16.mxu0 (!%p338_p12), %v1588_v5  ;;  %1436 = vmatprep.subr.bf16.mxu1 (!%p338_p12), %v1588_v5  ;;  %v1591_v10 = vld [vmem:[#allocation5 + $0x20] sm:$0xff] (!%p338_p12)   ;;  %v1597_v14 = vld [vmem:[%s2219_s2 + $0x8] sm:$0xff] (!%p338_p12)   ;;  %v1599_v16 = vld [vmem:[%s2219_s2 + $0x10] sm:$0xff] (!%p338_p12)  }
  0x68   : > { %1371 = vmatprep.mubr.bf16.mxu0 (!%p338_p12), %v1595_v8  ;;  %1387 = vmatprep.mubr.bf16.mxu1 (!%p338_p12), %v1596_v9  ;;  %v1598_v15 = vld [vmem:[%s2219_s2 + $0x48] sm:$0xff] (!%p338_p12)   ;;  %v1600_v17 = vld [vmem:[%s2219_s2 + $0x50] sm:$0xff] (!%p338_p12)   ;;  %v1601_v18 = vld [vmem:[%s2219_s2 + $0x18] sm:$0xff] (!%p338_p12)  }
  0x69   : > { %v1602_v19 = vld [vmem:[%s2219_s2 + $0x58] sm:$0xff] (!%p338_p12)   ;;  %v1603_v20 = vld [vmem:[%s2219_s2 + $0x20] sm:$0xff] (!%p338_p12)   ;;  %v1605_v22 = vld [vmem:[%s2219_s2 + $0x28] sm:$0xff] (!%p338_p12)  }
  0x6a   : > { %1358 = vmatpush3.bf16.msra.mxu0 (!%p338_p12), %v1588_v5  ;;  %1444 = vmatpush3.bf16.msra.mxu1 (!%p338_p12), %v1588_v5  ;;  %v1604_v21 = vld [vmem:[%s2219_s2 + $0x60] sm:$0xff] (!%p338_p12)   ;;  %v1606_v23 = vld [vmem:[%s2219_s2 + $0x68] sm:$0xff] (!%p338_p12)   ;;  %v1607_v24 = vld [vmem:[%s2219_s2 + $0x30] sm:$0xff] (!%p338_p12)  }
  0x6b   : > { %1359 = vmatprep.subr.bf16.mxu0 (!%p338_p12), %v1589_v6  ;;  %1437 = vmatprep.subr.bf16.mxu1 (!%p338_p12), %v1589_v6  ;;  %v1608_v25 = vld [vmem:[%s2219_s2 + $0x70] sm:$0xff] (!%p338_p12)   ;;  %v1609_v26 = vld [vmem:[%s2219_s2 + $0x38] sm:$0xff] (!%p338_p12)   ;;  %v2036_v29 = vld [vmem:[%s2221_s4] ss:$0 sm:$0xff] (!%p338_p12) }
  0x6c   : > { %v1610_v27 = vld [vmem:[%s2219_s2 + $0x78] sm:$0xff]  }
  0x6e   : > { %1360 = vmatpush3.bf16.msra.mxu0 %v1589_v6  ;;  %1445 = vmatpush3.bf16.msra.mxu1 %v1589_v6 }
  0x6f   : > { %1361 = vmatprep.subr.bf16.mxu0 %v1590_v7  ;;  %1438 = vmatprep.subr.bf16.mxu1 %v1590_v7 }
  0x72   : > { %1362 = vmatpush3.bf16.msra.mxu0 %v1590_v7  ;;  %1446 = vmatpush3.bf16.msra.mxu1 %v1590_v7 }
  0x73   : > { %1363 = vmatprep.subr.bf16.mxu0 %v1591_v10  ;;  %1439 = vmatprep.subr.bf16.mxu1 %v1591_v10 }
  0x76   : > { %1364 = vmatpush3.bf16.msra.mxu0 %v1591_v10  ;;  %1447 = vmatpush3.bf16.msra.mxu1 %v1591_v10 }
  0x77   : > { %1365 = vmatprep.subr.bf16.mxu0 %v1592_v11  ;;  %1440 = vmatprep.subr.bf16.mxu1 %v1592_v11 }
  0x7a   : > { %1366 = vmatpush3.bf16.msra.mxu0 %v1592_v11  ;;  %1448 = vmatpush3.bf16.msra.mxu1 %v1592_v11 }
  0x7b   : > { %1367 = vmatprep.subr.bf16.mxu0 %v1593_v12  ;;  %1441 = vmatprep.subr.bf16.mxu1 %v1593_v12 }
  0x7e   : > { %1368 = vmatpush3.bf16.msra.mxu0 %v1593_v12  ;;  %1449 = vmatpush3.bf16.msra.mxu1 %v1593_v12 }
  0x7f   : > { %1369 = vmatprep.subr.bf16.mxu0 %v1594_v13  ;;  %1442 = vmatprep.subr.bf16.mxu1 %v1594_v13 }
  0x82   : > { %1370 = vmatpush3.bf16.msra.mxu0 %v1594_v13  ;;  %1450 = vmatpush3.bf16.msra.mxu1 %v1594_v13 }
  0x85   : > { %1372 = vmatmul.mubr.bf16.vlgmr.msra.gmra.mrb[0].mxu0 %v1597_v14  ;;  %1388 = vmatmul.mubr.bf16.vlgmr.msra.gmra.mrb[0].mxu1 %v1598_v15 }
  0x86   : > { %1375 = vmatprep.mubr.bf16.mxu0 %v1599_v16  ;;  %1391 = vmatprep.mubr.bf16.mxu1 %v1600_v17 }
  0x8d   : > { %1376 = vmatmul.mubr.bf16.gmra.mrb[4].mxu0 %v1601_v18  ;;  %1392 = vmatmul.mubr.bf16.gmra.mrb[4].mxu1 %v1602_v19 }
  0x8e   : > { %1379 = vmatprep.mubr.bf16.mxu0 %v1603_v20  ;;  %1395 = vmatprep.mubr.bf16.mxu1 %v1604_v21 }
  0x95   : > { %1380 = vmatmul.mubr.bf16.gmra.mrb[8].mxu0 %v1605_v22  ;;  %1396 = vmatmul.mubr.bf16.gmra.mrb[8].mxu1 %v1606_v23 }
  0x96   : > { %1383 = vmatprep.mubr.bf16.mxu0 %v1607_v24  ;;  %1399 = vmatprep.mubr.bf16.mxu1 %v1608_v25 }
  0x9d   : > { %1384 = vmatmul.mubr.bf16.gmra.mrb[12].mxu0 %v1609_v26  ;;  %1400 = vmatmul.mubr.bf16.gmra.mrb[12].mxu1 %v1610_v27 }
 0x158   : > { %v1373_v28 = vpop.f32.mrb[0].mxu0  ;;  %v1389_v30 = vpop.f32.mrb[0].mxu1 }
 0x159   : > { %v575_v31 = vpop.f32.mrb[1].mxu0  ;;  %v639_v32 = vpop.f32.mrb[1].mxu1  ;;  %v584_v35 = vadd.f32 %v1373_v28, %v2036_v29  ;;  %v648_v36 = vadd.f32 %v1389_v30, %v2036_v29 }
 0x15a   : > { %v1374_v33 = vpop.f32.mrb[2].mxu0  ;;  %v1390_v34 = vpop.f32.mrb[2].mxu1  ;;  %v576_v41 = vadd.f32 %v2036_v29, %v575_v31  ;;  %v640_v42 = vadd.f32 %v2036_v29, %v639_v32 }
 0x15b   : > { %v587_v37 = vadd.f32 %v1374_v33, %v2036_v29  ;;  %v651_v38 = vadd.f32 %v1390_v34, %v2036_v29  ;;  %v578_v39 = vpop.f32.mrb[3].mxu0  ;;  %v642_v40 = vpop.f32.mrb[3].mxu1 }
 0x15c   : > { %v579_v43 = vadd.f32 %v2036_v29, %v578_v39  ;;  %v643_v44 = vadd.f32 %v2036_v29, %v642_v40 }
 0x15d   : > { %v703_v45 = vpack.c.bf16 %v587_v37, %v584_v35  ;;  %v711_v46 = vpack.c.bf16 %v651_v38, %v648_v36 }
 0x15e   : > { %v702_v47 = vpack.c.bf16 %v579_v43, %v576_v41  ;;  %v710_v48 = vpack.c.bf16 %v643_v44, %v640_v42 }
 0x15f   : > { %719 = vst [vmem:[#allocation2 + $0x8] sm:$0xff] %v703_v45  ;;  %727 = vst [vmem:[#allocation2 + $0x48] sm:$0xff] %v711_v46 }
 0x160   : > { %718 = vst [vmem:[#allocation2] sm:$0xff] %v702_v47  ;;  %726 = vst [vmem:[#allocation2 + $0x40] sm:$0xff] %v710_v48  ;;  %v1377_v49 = vpop.f32.mrb[4].mxu0  ;;  %v1393_v50 = vpop.f32.mrb[4].mxu1 }
 0x161   : > { %v591_v51 = vpop.f32.mrb[5].mxu0  ;;  %v655_v52 = vpop.f32.mrb[5].mxu1  ;;  %v600_v55 = vadd.f32 %v1377_v49, %v2036_v29  ;;  %v664_v56 = vadd.f32 %v1393_v50, %v2036_v29 }
 0x162   : > { %v1378_v53 = vpop.f32.mrb[6].mxu0  ;;  %v1394_v54 = vpop.f32.mrb[6].mxu1  ;;  %v592_v61 = vadd.f32 %v2036_v29, %v591_v51  ;;  %v656_v62 = vadd.f32 %v2036_v29, %v655_v52 }
 0x163   : > { %v603_v57 = vadd.f32 %v1378_v53, %v2036_v29  ;;  %v667_v58 = vadd.f32 %v1394_v54, %v2036_v29  ;;  %v594_v59 = vpop.f32.mrb[7].mxu0  ;;  %v658_v60 = vpop.f32.mrb[7].mxu1 }
 0x164   : > { %v595_v63 = vadd.f32 %v2036_v29, %v594_v59  ;;  %v659_v0 = vadd.f32 %v2036_v29, %v658_v60 }
 0x165   : > { %v705_v1 = vpack.c.bf16 %v603_v57, %v600_v55  ;;  %v713_v2 = vpack.c.bf16 %v667_v58, %v664_v56 }
 0x166   : > { %v704_v3 = vpack.c.bf16 %v595_v63, %v592_v61  ;;  %v712_v4 = vpack.c.bf16 %v659_v0, %v656_v62 }
 0x167   : > { %721 = vst [vmem:[#allocation2 + $0x18] sm:$0xff] %v705_v1  ;;  %729 = vst [vmem:[#allocation2 + $0x58] sm:$0xff] %v713_v2 }
 0x168   : > { %720 = vst [vmem:[#allocation2 + $0x10] sm:$0xff] %v704_v3  ;;  %728 = vst [vmem:[#allocation2 + $0x50] sm:$0xff] %v712_v4  ;;  %v1381_v5 = vpop.f32.mrb[8].mxu0  ;;  %v1397_v6 = vpop.f32.mrb[8].mxu1 }
 0x169   : > { %v607_v7 = vpop.f32.mrb[9].mxu0  ;;  %v671_v8 = vpop.f32.mrb[9].mxu1  ;;  %v616_v11 = vadd.f32 %v1381_v5, %v2036_v29  ;;  %v680_v12 = vadd.f32 %v1397_v6, %v2036_v29 }
 0x16a   : > { %v1382_v9 = vpop.f32.mrb[10].mxu0  ;;  %v1398_v10 = vpop.f32.mrb[10].mxu1  ;;  %v608_v17 = vadd.f32 %v2036_v29, %v607_v7  ;;  %v672_v18 = vadd.f32 %v2036_v29, %v671_v8 }
 0x16b   : > { %v619_v13 = vadd.f32 %v1382_v9, %v2036_v29  ;;  %v683_v14 = vadd.f32 %v1398_v10, %v2036_v29  ;;  %v610_v15 = vpop.f32.mrb[11].mxu0  ;;  %v674_v16 = vpop.f32.mrb[11].mxu1 }
 0x16c   : > { %v611_v19 = vadd.f32 %v2036_v29, %v610_v15  ;;  %v675_v20 = vadd.f32 %v2036_v29, %v674_v16 }
 0x16d   : > { %v707_v21 = vpack.c.bf16 %v619_v13, %v616_v11  ;;  %v715_v22 = vpack.c.bf16 %v683_v14, %v680_v12 }
 0x16e   : > { %v706_v23 = vpack.c.bf16 %v611_v19, %v608_v17  ;;  %v714_v24 = vpack.c.bf16 %v675_v20, %v672_v18 }
 0x16f   : > { %723 = vst [vmem:[#allocation2 + $0x28] sm:$0xff] %v707_v21  ;;  %731 = vst [vmem:[#allocation2 + $0x68] sm:$0xff] %v715_v22 }
 0x170   : > { %722 = vst [vmem:[#allocation2 + $0x20] sm:$0xff] %v706_v23  ;;  %730 = vst [vmem:[#allocation2 + $0x60] sm:$0xff] %v714_v24  ;;  %v1385_v25 = vpop.f32.mrb[12].mxu0  ;;  %v1401_v26 = vpop.f32.mrb[12].mxu1 }
 0x171   : > { %v623_v27 = vpop.f32.mrb[13].mxu0  ;;  %v687_v28 = vpop.f32.mrb[13].mxu1  ;;  %v632_v32 = vadd.f32 %v1385_v25, %v2036_v29  ;;  %v696_v33 = vadd.f32 %v1401_v26, %v2036_v29 }
 0x172   : > { %v1386_v30 = vpop.f32.mrb[14].mxu0  ;;  %v1402_v31 = vpop.f32.mrb[14].mxu1  ;;  %v624_v38 = vadd.f32 %v2036_v29, %v623_v27  ;;  %v688_v39 = vadd.f32 %v2036_v29, %v687_v28 }
 0x173   : > { %v635_v34 = vadd.f32 %v1386_v30, %v2036_v29  ;;  %v699_v35 = vadd.f32 %v1402_v31, %v2036_v29  ;;  %v626_v36 = vpop.f32.mrb[15].mxu0  ;;  %v690_v37 = vpop.f32.mrb[15].mxu1 }
 0x174   : > { %v627_v40 = vadd.f32 %v2036_v29, %v626_v36  ;;  %v691_v41 = vadd.f32 %v2036_v29, %v690_v37 }
 0x175   : > { %v709_v42 = vpack.c.bf16 %v635_v34, %v632_v32  ;;  %v717_v43 = vpack.c.bf16 %v699_v35, %v696_v33 }
 0x176   : > { %v708_v44 = vpack.c.bf16 %v627_v40, %v624_v38  ;;  %v716_v45 = vpack.c.bf16 %v691_v41, %v688_v39 }
 0x177   : > { %725 = vst [vmem:[#allocation2 + $0x38] sm:$0xff] %v709_v42  ;;  %733 = vst [vmem:[#allocation2 + $0x78] sm:$0xff] %v717_v43 }
 0x178   : > { %724 = vst [vmem:[#allocation2 + $0x30] sm:$0xff] %v708_v44  ;;  %732 = vst [vmem:[#allocation2 + $0x70] sm:$0xff] %v716_v45 }
 0x179 PF: > { %p1294_p13 = scmp.ne.s32.totalorder %s1747_s23, 0 }
 0x17a   : > { %v1776_v46 = vmov (!%p1294_p13), 0.0  }
 0x17b   : > { %736 = sbr.rel (%p1294_p13) target bundleno = 387 (0x183), region = 90  ;;  %737 = vst [vmem:[#allocation3] sm:$0xff] (!%p1294_p13), %v1776_v46  ;;  %738 = vst [vmem:[#allocation3 + $0x8] sm:$0xff] (!%p1294_p13), %v1776_v46 }
 0x17c   : > { %739 = vst [vmem:[#allocation3 + $0x10] sm:$0xff] (!%p1294_p13), %v1776_v46  ;;  %740 = vst [vmem:[#allocation3 + $0x18] sm:$0xff] (!%p1294_p13), %v1776_v46 }
 0x17d   : > { %741 = vst [vmem:[#allocation3 + $0x20] sm:$0xff] (!%p1294_p13), %v1776_v46  ;;  %742 = vst [vmem:[#allocation3 + $0x28] sm:$0xff] (!%p1294_p13), %v1776_v46 }
 0x17e   : > { %743 = vst [vmem:[#allocation3 + $0x30] sm:$0xff] (!%p1294_p13), %v1776_v46  ;;  %744 = vst [vmem:[#allocation3 + $0x38] sm:$0xff] (!%p1294_p13), %v1776_v46 }
 0x17f   : > { %745 = vst [vmem:[#allocation3 + $0x40] sm:$0xff] (!%p1294_p13), %v1776_v46  ;;  %746 = vst [vmem:[#allocation3 + $0x48] sm:$0xff] (!%p1294_p13), %v1776_v46 }
 0x180   : > { %747 = vst [vmem:[#allocation3 + $0x50] sm:$0xff] (!%p1294_p13), %v1776_v46  ;;  %748 = vst [vmem:[#allocation3 + $0x58] sm:$0xff] (!%p1294_p13), %v1776_v46 }
 0x181   : > { %749 = vst [vmem:[#allocation3 + $0x60] sm:$0xff] (!%p1294_p13), %v1776_v46  ;;  %750 = vst [vmem:[#allocation3 + $0x68] sm:$0xff] (!%p1294_p13), %v1776_v46 }
 0x182   : > { %751 = vst [vmem:[#allocation3 + $0x70] sm:$0xff] %v1776_v46  ;;  %752 = vst [vmem:[#allocation3 + $0x78] sm:$0xff] %v1776_v46 }
 0x183 PF: > { %v2072_v29 = vld [vmem:[%s1965_s18] sm:$0xff]  ;;  %v2075_v47 = vld [vmem:[%s1965_s18 + $0x10] sm:$0xff]  ;;  %p766_p0 = scmp.lt.s32.totalorder %s1755_s25, 0  ;;  %s767_s30 = ssub.s32 0, %s1755_s25  ;;  %v754_v58 = vld [vmem:[%s1965_s18 + $0x8] sm:$0xff] }
 0x184   : > { %v757_v48 = vunpack.c.l.s8.bf16 %v2072_v29  ;;  %v761_v49 = vunpack.c.l.s8.bf16 %v2075_v47  ;;  %s1296_s10 = smin.u32 %s1755_s25, %s767_s30  ;;  %s1295_s9 = sshll.u32 %s1747_s23, 7  ;;  %v756_v59 = vld [vmem:[%s1965_s18 + $0x18] sm:$0xff]  ;;  %v758_v60 = vunpack.c.h.s8.bf16 %v2072_v29  ;;  %v762_v61 = vunpack.c.h.s8.bf16 %v2075_v47  ;;  %v794_v2 = vld [vmem:[#allocation3 + $0x10] sm:$0xff]  ;;  %v792_v4 = vld [vmem:[#allocation3] sm:$0xff] }
 0x185   : > { %s769_s21 = sand.u32 1, %s1296_s10   ;;  %s778_s8 = sshra.s32 %s1295_s9, 4  ;;  %v759_v62 = vunpack.c.l.s8.bf16 %v754_v58  ;;  %v763_v63 = vunpack.c.l.s8.bf16 %v756_v59  ;;  %v760_v0 = vunpack.c.h.s8.bf16 %v754_v58  ;;  %v764_v1 = vunpack.c.h.s8.bf16 %v756_v59  ;;  %v795_v8 = vld [vmem:[#allocation3 + $0x18] sm:$0xff]  ;;  %v793_v14 = vld [vmem:[#allocation3 + $0x8] sm:$0xff]  ;;  %v796_v28 = vld [vmem:[#allocation3 + $0x20] sm:$0xff] }
 0x186   : > { %1419 = vmatprep.mubr.bf16.mxu0 %v757_v48  ;;  %1427 = vmatprep.mubr.bf16.mxu1 %v761_v49  ;;  %s770_s16 = ssub.s32 0, %s769_s21  ;;  %v798_v26 = vld [vmem:[#allocation3 + $0x30] sm:$0xff]  ;;  %v799_v33 = vld [vmem:[#allocation3 + $0x38] sm:$0xff]  ;;  %v797_v39 = vld [vmem:[#allocation3 + $0x28] sm:$0xff]  ;;  %p1301_p7 = scmp.ne.s32.totalorder %s1747_s23, 1 }
 0x187   : > { %s2289_s16 = smov (!%p766_p0, %s770_s16), %s769_s21  ;;  %v800_v5 = vld [vmem:[#allocation3 + $0x40] sm:$0xff]  ;;  %v801_v15 = vld [vmem:[#allocation3 + $0x48] sm:$0xff]  ;;  %v963_v58 = vld [vmem:[%s1981_s14 + $0x30] sm:$0xff] (!%p1301_p7)  ;;  %s1078_s23 = sadd.s32 (!%p1301_p7), 1, %s1755_s25 }
 0x188   : > { %p1298_p5 = scmp.lt.s32.totalorder %s2289_s16, 0  ;;  %s776_s20 = sadd.s32 2, %s2289_s16  ;;  %v802_v3 = vld [vmem:[#allocation3 + $0x50] sm:$0xff]  ;;  %v803_v9 = vld [vmem:[#allocation3 + $0x58] sm:$0xff]  ;;  %v966_v59 = vld [vmem:[%s1981_s14 + $0x48] sm:$0xff] (!%p1301_p7) }
 0x189   : > { %v806_v27 = vld [vmem:[#allocation3 + $0x70] sm:$0xff]  ;;  %v804_v30 = vld [vmem:[#allocation3 + $0x60] sm:$0xff]  ;;  %v807_v34 = vld [vmem:[#allocation3 + $0x78] sm:$0xff]  ;;  %s1080_s18 = ssub.s32 (!%p1301_p7), 0, %s1078_s23  ;;  %p1079_p9 = scmp.lt.s32.totalorder (!%p1301_p7), %s1078_s23, 0 }
 0x18a   : > { %s2291_s20 = smov (!%p1298_p5, %s776_s20), %s2289_s16  ;;  %v805_v40 = vld [vmem:[#allocation3 + $0x68] sm:$0xff]  ;;  %s1303_s13 = smin.u32 (!%p1301_p7), %s1080_s18, %s1078_s23 }
 0x18b   : > { %s1299_s17 = sshll.u32 %s2291_s20, 4  ;;  %s1082_s28 = sand.u32 (!%p1301_p7), 1, %s1303_s13  }
 0x18c   : > { %s781_s12 = sadd.s32 %s1299_s17, %s778_s8  ;;  %s1083_s30 = ssub.s32 (!%p1301_p7), 0, %s1082_s28 }
 0x18d   : > { %s1300_s6 = sshll.u32 %s781_s12, 3  ;;  %s1302_s21 = sshll.u32 (!%p1301_p7), %s1751_s24, 7 }
 0x18e   : > { %s2083_s15 = scalar_lea.vmem [#allocation2], %s1300_s6  ;;  %s1091_s9 = sshra.s32 (!%p1301_p7), %s1302_s21, 4 }
 0x18f   : > { %v784_v50 = vld [vmem:[%s2083_s15] sm:$0xff]  ;;  %v785_v51 = vld [vmem:[%s2083_s15 + $0x8] sm:$0xff]  ;;  %v786_v52 = vld [vmem:[%s2083_s15 + $0x10] sm:$0xff] }
 0x190   : > { %1403 = vmatprep.subr.bf16.mxu0 %v784_v50  ;;  %1451 = vmatprep.subr.bf16.mxu1 %v784_v50  ;;  %v787_v53 = vld [vmem:[%s2083_s15 + $0x18] sm:$0xff]  ;;  %v788_v54 = vld [vmem:[%s2083_s15 + $0x20] sm:$0xff]  ;;  %v789_v55 = vld [vmem:[%s2083_s15 + $0x28] sm:$0xff] }
 0x191   : > { %1404 = vmatpush3.bf16.msra.mxu0 %v784_v50  ;;  %1459 = vmatpush3.bf16.msra.mxu1 %v784_v50  ;;  %v790_v56 = vld [vmem:[%s2083_s15 + $0x30] sm:$0xff]  ;;  %v791_v57 = vld [vmem:[%s2083_s15 + $0x38] sm:$0xff] }
 0x192   : > { %1405 = vmatprep.subr.bf16.mxu0 %v785_v51  ;;  %1452 = vmatprep.subr.bf16.mxu1 %v785_v51  ;;  %v959_v50 = vld [vmem:[%s1981_s14 + $0x10] sm:$0xff] (!%p1301_p7) }
 0x195   : > { %1406 = vmatpush3.bf16.msra.mxu0 %v785_v51  ;;  %1460 = vmatpush3.bf16.msra.mxu1 %v785_v51  ;;  %v957_v51 = vld [vmem:[%s1981_s14] sm:$0xff] (!%p1301_p7) }
 0x196   : > { %1407 = vmatprep.subr.bf16.mxu0 %v786_v52  ;;  %1453 = vmatprep.subr.bf16.mxu1 %v786_v52 }
 0x199   : > { %1408 = vmatpush3.bf16.msra.mxu0 %v786_v52  ;;  %1461 = vmatpush3.bf16.msra.mxu1 %v786_v52  ;;  %v1777_v52 = vmov (!%p1301_p7), 0  }
 0x19a   : > { %1409 = vmatprep.subr.bf16.mxu0 %v787_v53  ;;  %1454 = vmatprep.subr.bf16.mxu1 %v787_v53 }
 0x19b   : > { %1612 = vset.pattern.permute.xlu1 (!%p1301_p7), %v1777_v52  ;;  %1611 = vset.pattern.permute.xlu0 (!%p1301_p7), %v1777_v52 }
 0x19c   : > { %985 = vperm.xlu1 (!%p1301_p7), %1612, %v959_v50   ;;  %975 = vperm.xlu0 (!%p1301_p7), %1611, %v957_v51  }
 0x19d   : > { %1410 = vmatpush3.bf16.msra.mxu0 %v787_v53  ;;  %1462 = vmatpush3.bf16.msra.mxu1 %v787_v53  ;;  %v960_v53 = vld [vmem:[%s1981_s14 + $0x18] sm:$0xff] (!%p1301_p7) }
 0x19e   : > { %1411 = vmatprep.subr.bf16.mxu0 %v788_v54  ;;  %1455 = vmatprep.subr.bf16.mxu1 %v788_v54 }
 0x1a0   : > { %990 = vperm.xlu1 (!%p1301_p7), %1612, %v960_v53  }
 0x1a1   : > { %1412 = vmatpush3.bf16.msra.mxu0 %v788_v54  ;;  %1463 = vmatpush3.bf16.msra.mxu1 %v788_v54  ;;  %v958_v54 = vld [vmem:[%s1981_s14 + $0x8] sm:$0xff] (!%p1301_p7) }
 0x1a2   : > { %1413 = vmatprep.subr.bf16.mxu0 %v789_v55  ;;  %1456 = vmatprep.subr.bf16.mxu1 %v789_v55 }
 0x1a3   : > { %980 = vperm.xlu0 (!%p1301_p7), %1611, %v958_v54  }
 0x1a5   : > { %1414 = vmatpush3.bf16.msra.mxu0 %v789_v55  ;;  %1464 = vmatpush3.bf16.msra.mxu1 %v789_v55  ;;  %v962_v55 = vld [vmem:[%s1981_s14 + $0x28] sm:$0xff] (!%p1301_p7) }
 0x1a6   : > { %1415 = vmatprep.subr.bf16.mxu0 %v790_v56  ;;  %1457 = vmatprep.subr.bf16.mxu1 %v790_v56 }
 0x1a7   : > { %1000 = vperm.xlu1 (!%p1301_p7), %1612, %v962_v55  }
 0x1a9   : > { %1416 = vmatpush3.bf16.msra.mxu0 %v790_v56  ;;  %1465 = vmatpush3.bf16.msra.mxu1 %v790_v56  ;;  %v961_v56 = vld [vmem:[%s1981_s14 + $0x20] sm:$0xff] (!%p1301_p7) }
 0x1aa   : > { %1417 = vmatprep.subr.bf16.mxu0 %v791_v57  ;;  %1458 = vmatprep.subr.bf16.mxu1 %v791_v57 }
 0x1ab   : > { %995 = vperm.xlu0 (!%p1301_p7), %1611, %v961_v56  }
 0x1ad   : > { %1418 = vmatpush3.bf16.msra.mxu0 %v791_v57  ;;  %1466 = vmatpush3.bf16.msra.mxu1 %v791_v57  ;;  %v964_v57 = vld [vmem:[%s1981_s14 + $0x38] sm:$0xff] (!%p1301_p7) }
 0x1ae   : > { %1010 = vperm.xlu1 (!%p1301_p7), %1612, %v964_v57  }
 0x1af   : > { %1005 = vperm.xlu0 (!%p1301_p7), %1611, %v963_v58  }
 0x1b0   : > { %1420 = vmatmul.mubr.bf16.vlgmr.msra.gmra.mrb[0].mxu0 %v758_v60  ;;  %1428 = vmatmul.mubr.bf16.vlgmr.msra.gmra.mrb[0].mxu1 %v762_v61  ;;  %v965_v60 = vld [vmem:[%s1981_s14 + $0x40] sm:$0xff] (!%p1301_p7)  ;;  %v968_v61 = vld [vmem:[%s1981_s14 + $0x58] sm:$0xff] (!%p1301_p7) }
 0x1b1   : > { %1423 = vmatprep.mubr.bf16.mxu0 %v759_v62  ;;  %1431 = vmatprep.mubr.bf16.mxu1 %v763_v63  ;;  %v967_v62 = vld [vmem:[%s1981_s14 + $0x50] sm:$0xff] (!%p1301_p7)  ;;  %v970_v63 = vld [vmem:[%s1981_s14 + $0x68] sm:$0xff] (!%p1301_p7) }
 0x1b2   : > { %1020 = vperm.xlu1 (!%p1301_p7), %1612, %v966_v59  }
 0x1b3   : > { %1015 = vperm.xlu0 (!%p1301_p7), %1611, %v965_v60  }
 0x1b6   : > { %1030 = vperm.xlu1 (!%p1301_p7), %1612, %v968_v61  }
 0x1b7   : > { %1025 = vperm.xlu0 (!%p1301_p7), %1611, %v967_v62  }
 0x1b8   : > { %1424 = vmatmul.mubr.bf16.gmra.mrb[4].mxu0 %v760_v0  ;;  %1432 = vmatmul.mubr.bf16.gmra.mrb[4].mxu1 %v764_v1  ;;  %v969_v0 = vld [vmem:[%s1981_s14 + $0x60] sm:$0xff] (!%p1301_p7)  ;;  %v972_v1 = vld [vmem:[%s1981_s14 + $0x78] sm:$0xff] (!%p1301_p7) }
 0x1ba   : > { %1040 = vperm.xlu1 (!%p1301_p7), %1612, %v970_v63  }
 0x1bb   : > { %1035 = vperm.xlu0 (!%p1301_p7), %1611, %v969_v0  }
 0x1be   : > { %1050 = vperm.xlu1 (!%p1301_p7), %1612, %v972_v1  }
 0x283   : > { %v1421_v6 = vpop.f32.mrb[0].mxu0  ;;  %v1429_v7 = vpop.f32.mrb[0].mxu1 }
 0x284   : > { %v907_v10 = vadd.f32 %v1421_v6, %v794_v2  ;;  %v915_v11 = vadd.f32 %v1429_v7, %v802_v3  ;;  %v842_v12 = vpop.f32.mrb[1].mxu0  ;;  %v874_v13 = vpop.f32.mrb[1].mxu1  ;;  %v971_v2 = vld [vmem:[%s1981_s14 + $0x70] sm:$0xff] (!%p1301_p7) }
 0x285   : > { %v905_v16 = vadd.f32 %v842_v12, %v792_v4  ;;  %v913_v17 = vadd.f32 %v874_v13, %v800_v5  ;;  %v1422_v18 = vpop.f32.mrb[2].mxu0  ;;  %v1430_v19 = vpop.f32.mrb[2].mxu1  ;;  %1045 = vperm.xlu0 (!%p1301_p7), %1611, %v971_v2  }
 0x286   : > { %923 = vst [vmem:[#allocation3 + $0x10] sm:$0xff] %v907_v10  ;;  %931 = vst [vmem:[#allocation3 + $0x50] sm:$0xff] %v915_v11  ;;  %v908_v20 = vadd.f32 %v1422_v18, %v795_v8  ;;  %v916_v21 = vadd.f32 %v1430_v19, %v803_v9  ;;  %v845_v22 = vpop.f32.mrb[3].mxu0  ;;  %v877_v23 = vpop.f32.mrb[3].mxu1 }
 0x287   : > { %921 = vst [vmem:[#allocation3] sm:$0xff] %v905_v16  ;;  %929 = vst [vmem:[#allocation3 + $0x40] sm:$0xff] %v913_v17  ;;  %v906_v24 = vadd.f32 %v845_v22, %v793_v14  ;;  %v914_v25 = vadd.f32 %v877_v23, %v801_v15  ;;  %v986_v5 = vpop.permute.xlu1 (!%p1301_p7), %985  ;;  %v976_v6 = vpop.permute.xlu0 (!%p1301_p7), %975 }
 0x288   : > { %924 = vst [vmem:[#allocation3 + $0x18] sm:$0xff] %v908_v20  ;;  %932 = vst [vmem:[#allocation3 + $0x58] sm:$0xff] %v916_v21 }
 0x289   : > { %922 = vst [vmem:[#allocation3 + $0x8] sm:$0xff] %v906_v24  ;;  %930 = vst [vmem:[#allocation3 + $0x48] sm:$0xff] %v914_v25 }
 0x28b   : > { %v1425_v31 = vpop.f32.mrb[4].mxu0  ;;  %v1433_v32 = vpop.f32.mrb[4].mxu1  ;;  %940 = sbr.rel (%p1301_p7) target bundleno = 778 (0x30a), region = 94 }
 0x28c   : > { %v911_v35 = vadd.f32 %v1425_v31, %v798_v26  ;;  %v919_v36 = vadd.f32 %v1433_v32, %v806_v27  ;;  %v858_v37 = vpop.f32.mrb[5].mxu0  ;;  %v890_v38 = vpop.f32.mrb[5].mxu1 }
 0x28d   : > { %v909_v41 = vadd.f32 %v858_v37, %v796_v28  ;;  %v917_v42 = vadd.f32 %v890_v38, %v804_v30  ;;  %v1426_v43 = vpop.f32.mrb[6].mxu0  ;;  %v1434_v44 = vpop.f32.mrb[6].mxu1  ;;  %v943_v3 = vld [vmem:[#allocation3 + $0x10] sm:$0xff] (!%p1301_p7) }
 0x28e   : > { %927 = vst [vmem:[#allocation3 + $0x30] sm:$0xff] %v911_v35  ;;  %935 = vst [vmem:[#allocation3 + $0x70] sm:$0xff] %v919_v36  ;;  %v912_v45 = vadd.f32 %v1426_v43, %v799_v33  ;;  %v920_v46 = vadd.f32 %v1434_v44, %v807_v34  ;;  %v861_v29 = vpop.f32.mrb[7].mxu0  ;;  %v893_v47 = vpop.f32.mrb[7].mxu1  ;;  %v941_v4 = vld [vmem:[#allocation3] sm:$0xff] (!%p1301_p7)  ;;  %v1055_v7 = vmul.f32 (!%p1301_p7), %v986_v5, %v943_v3 }
 0x28f   : > { %925 = vst [vmem:[#allocation3 + $0x20] sm:$0xff] %v909_v41  ;;  %933 = vst [vmem:[#allocation3 + $0x60] sm:$0xff] %v917_v42  ;;  %v910_v48 = vadd.f32 %v861_v29, %v797_v39  ;;  %v918_v49 = vadd.f32 %v893_v47, %v805_v40  ;;  %v1053_v8 = vmul.f32 (!%p1301_p7), %v976_v6, %v941_v4  ;;  %v944_v9 = vld [vmem:[#allocation3 + $0x18] sm:$0xff] (!%p1301_p7)  ;;  %v991_v11 = vpop.permute.xlu1 (!%p1301_p7), %990  ;;  %v981_v12 = vpop.permute.xlu0 (!%p1301_p7), %980  ;;  %v949_v32 = vld [vmem:[#allocation3 + $0x40] sm:$0xff] (!%p1301_p7) }
 0x290   : > { %928 = vst [vmem:[#allocation3 + $0x38] sm:$0xff] %v912_v45  ;;  %936 = vst [vmem:[#allocation3 + $0x78] sm:$0xff] %v920_v46  ;;  %v942_v10 = vld [vmem:[#allocation3 + $0x8] sm:$0xff] (!%p1301_p7)  ;;  %v1056_v13 = vmul.f32 (!%p1301_p7), %v991_v11, %v944_v9  ;;  %v952_v38 = vld [vmem:[#allocation3 + $0x58] sm:$0xff] (!%p1301_p7) }
 0x291   : > { %926 = vst [vmem:[#allocation3 + $0x28] sm:$0xff] %v910_v48  ;;  %934 = vst [vmem:[#allocation3 + $0x68] sm:$0xff] %v918_v49  ;;  %v1054_v14 = vmul.f32 (!%p1301_p7), %v981_v12, %v942_v10  ;;  %v950_v31 = vld [vmem:[#allocation3 + $0x48] sm:$0xff] (!%p1301_p7)  ;;  %v951_v39 = vld [vmem:[#allocation3 + $0x50] sm:$0xff] (!%p1301_p7) }
 0x292   : > { %s2293_s30 = smov (!%p1079_p9, %s1083_s30), %s1082_s28  ;;  %1107 = vst [vmem:[%s1983_s11 + $0x10] sm:$0xff] %v1055_v7  ;;  %1105 = vst [vmem:[%s1983_s11] sm:$0xff] %v1053_v8  ;;  %v1071_v17 = vpack.c.bf16 %v1056_v13, %v1055_v7 }
 0x293   : > { %p1305_p4 = scmp.lt.s32.totalorder %s2293_s30, 0  ;;  %s1089_s10 = sadd.s32 2, %s2293_s30  ;;  %1108 = vst [vmem:[%s1983_s11 + $0x18] sm:$0xff] %v1056_v13  ;;  %v1070_v18 = vpack.c.bf16 %v1054_v14, %v1053_v8  ;;  %1106 = vst [vmem:[%s1983_s11 + $0x8] sm:$0xff] %v1054_v14  ;;  %v1001_v19 = vpop.permute.xlu1 %1000  ;;  %v996_v20 = vpop.permute.xlu0 %995 }
 0x295   : > { %s2295_s10 = smov (!%p1305_p4, %s1089_s10), %s2293_s30  ;;  %v947_v24 = vld [vmem:[#allocation3 + $0x30] sm:$0xff] }
 0x296   : > { %s1306_s16 = sshll.u32 %s2295_s10, 4  ;;  %v945_v16 = vld [vmem:[#allocation3 + $0x20] sm:$0xff]  ;;  %v955_v52 = vld [vmem:[#allocation3 + $0x70] sm:$0xff] }
 0x297   : > { %s1094_s25 = sadd.s32 %s1306_s16, %s1091_s9  ;;  %v1057_v22 = vmul.f32 %v996_v20, %v945_v16  ;;  %v948_v23 = vld [vmem:[#allocation3 + $0x38] sm:$0xff]  ;;  %v1011_v26 = vpop.permute.xlu1 %1010  ;;  %v1006_v27 = vpop.permute.xlu0 %1005  ;;  %v953_v46 = vld [vmem:[#allocation3 + $0x60] sm:$0xff] }
 0x298   : > { %s1307_s14 = sshll.u32 %s1094_s25, 3  ;;  %v946_v15 = vld [vmem:[#allocation3 + $0x28] sm:$0xff]  ;;  %v1060_v28 = vmul.f32 %v1011_v26, %v948_v23  ;;  %v1059_v30 = vmul.f32 %v1006_v27, %v947_v24  ;;  %v956_v51 = vld [vmem:[#allocation3 + $0x78] sm:$0xff] }
 0x299   : > { %s2120_s20 = scalar_lea.vmem [#allocation2], %s1307_s14  ;;  %v1058_v21 = vmul.f32 %v1001_v19, %v946_v15  ;;  %1109 = vst [vmem:[%s1983_s11 + $0x20] sm:$0xff] %v1057_v22  ;;  %v954_v45 = vld [vmem:[#allocation3 + $0x68] sm:$0xff] }
 0x29a   : > { %1098 = vst [vmem:[%s2120_s20 + $0x8] sm:$0xff] %v1071_v17  ;;  %1097 = vst [vmem:[%s2120_s20] sm:$0xff] %v1070_v18  ;;  %v1073_v33 = vpack.c.bf16 %v1060_v28, %v1059_v30 }
 0x29b   : > { %1110 = vst [vmem:[%s1983_s11 + $0x28] sm:$0xff] %v1058_v21  ;;  %v1072_v25 = vpack.c.bf16 %v1058_v21, %v1057_v22  ;;  %1112 = vst [vmem:[%s1983_s11 + $0x38] sm:$0xff] %v1060_v28  ;;  %v1021_v34 = vpop.permute.xlu1 %1020  ;;  %v1016_v35 = vpop.permute.xlu0 %1015 }
 0x29c   : > { %1111 = vst [vmem:[%s1983_s11 + $0x30] sm:$0xff] %v1059_v30  ;;  %1100 = vst [vmem:[%s2120_s20 + $0x18] sm:$0xff] %v1073_v33  ;;  %v1062_v36 = vmul.f32 %v1021_v34, %v950_v31  ;;  %v1061_v37 = vmul.f32 %v1016_v35, %v949_v32 }
 0x29d   : > { %1099 = vst [vmem:[%s2120_s20 + $0x10] sm:$0xff] %v1072_v25 }
 0x29e   : > { %1114 = vst [vmem:[%s1983_s11 + $0x48] sm:$0xff] %v1062_v36  ;;  %v1074_v40 = vpack.c.bf16 %v1062_v36, %v1061_v37  ;;  %1113 = vst [vmem:[%s1983_s11 + $0x40] sm:$0xff] %v1061_v37 }
 0x29f   : > { %v1031_v41 = vpop.permute.xlu1 %1030  ;;  %v1026_v42 = vpop.permute.xlu0 %1025 }
 0x2a0   : > { %1101 = vst [vmem:[%s2120_s20 + $0x20] sm:$0xff] %v1074_v40  ;;  %v1064_v43 = vmul.f32 %v1031_v41, %v952_v38  ;;  %v1063_v44 = vmul.f32 %v1026_v42, %v951_v39 }
 0x2a2   : > { %1116 = vst [vmem:[%s1983_s11 + $0x58] sm:$0xff] %v1064_v43  ;;  %v1075_v29 = vpack.c.bf16 %v1064_v43, %v1063_v44  ;;  %1115 = vst [vmem:[%s1983_s11 + $0x50] sm:$0xff] %v1063_v44 }
 0x2a3   : > { %v1041_v47 = vpop.permute.xlu1 %1040  ;;  %v1036_v48 = vpop.permute.xlu0 %1035 }
 0x2a4   : > { %1102 = vst [vmem:[%s2120_s20 + $0x28] sm:$0xff] %v1075_v29  ;;  %v1066_v49 = vmul.f32 %v1041_v47, %v954_v45  ;;  %v1065_v50 = vmul.f32 %v1036_v48, %v953_v46 }
 0x2a6   : > { %1118 = vst [vmem:[%s1983_s11 + $0x68] sm:$0xff] %v1066_v49  ;;  %v1076_v53 = vpack.c.bf16 %v1066_v49, %v1065_v50  ;;  %1117 = vst [vmem:[%s1983_s11 + $0x60] sm:$0xff] %v1065_v50 }
 0x2a7   : > { %v1051_v54 = vpop.permute.xlu1 %1050 }
 0x2a8   : > { %1103 = vst [vmem:[%s2120_s20 + $0x30] sm:$0xff] %v1076_v53  ;;  %v1068_v56 = vmul.f32 %v1051_v54, %v956_v51 }
 0x2aa   : > { %1120 = vst [vmem:[%s1983_s11 + $0x78] sm:$0xff] %v1068_v56 }
 0x304   : > { %v1046_v55 = vpop.permute.xlu0 %1045 }
 0x305   : > { %v1067_v57 = vmul.f32 %v1046_v55, %v955_v52 }
 0x307   : > { %v1077_v58 = vpack.c.bf16 %v1068_v56, %v1067_v57  ;;  %1119 = vst [vmem:[%s1983_s11 + $0x70] sm:$0xff] %v1067_v57 }
 0x309   : > { %1104 = vst [vmem:[%s2120_s20 + $0x38] sm:$0xff] %v1077_v58 }
 0x30a PF: > { %s1314_s8 = sshll.u32 %s1751_s24, 11  ;;  %s2255_s6 = sld [smem:[#allocation20_spill]] }
 0x30b   : > { %s1135_s23 = sshll.u32 %s1983_s11, 4  ;;  %s2153_s18 = scalar_lea.sflag [#allocation7], %s321_s5  ;;  %s2149_s23 = int_to_ptr.vmem [resolvable:$true] %s1135_s23 }
 0x30c   : > { %s1641_s13 = scalar_lea.vmem %s2149_s23, 2048  ;;  %p2256_p1 = scmp.ne.s32.totalorder %s2245_s7, 0 }
 0x30d   : > { %p1642_p10 = scmp.ne.s32.totalorder %s2149_s23, %s1641_s13  ;;  %s1778_s24 = smov [#allocation8]  }
 0x30e   : > { %s1645_s28 = sshll.u32 %s1778_s24, 4  ;;  %s1646_s28 = int_to_ptr.vmem [resolvable:$false] %s1645_s28 }
 0x30f   : > { %p1643_p2 = pnand %p1642_p10, %p2256_p1  ;;  %s1647_s30 = scalar_lea.vmem %s1646_s28, 4096 }
 0x310   : > { %s2146_s15 = scalar_lea.hbm %s2255_s6, %s1314_s8  ;;  %p1648_p6 = scmp.lt.s32.totalorder %s2149_s23, %s1646_s28 }
 0x311   : > { %p1644_p3 = pneg %p1643_p2  ;;  %p1649_p8 = scmp.lt.s32.totalorder %s1647_s30, %s1641_s13 }
 0x313   : > { %p1650_p11 = por %p1649_p8, %p1648_p6 }
 0x315   : > { %p1651_p12 = pnand %p1650_p11, %p1644_p3 }
 0x317   : > { %1654 = shalt.err (!%p1651_p12)
}
 0x318   : > { %s1655_s5 = scalar_lea.hbm %s2146_s15, 2048  ;;  %s1659_s21 = scalar_lea.hbm %s2255_s6, 4096 }
 0x319   : > { %p1656_p13 = scmp.ne.s32.totalorder %s2146_s15, %s1655_s5  ;;  %p1660_p7 = scmp.lt.u32.totalorder %s2146_s15, %s2255_s6 }
 0x31a   : > { %p1661_p9 = scmp.lt.u32.totalorder %s1659_s21, %s1655_s5  ;;  %p1663_p10 = scmp.lt.u32.totalorder %s1655_s5, %s2146_s15 }
 0x31b   : > { %p1657_p0 = pnand %p1656_p13, %p2256_p1 }
 0x31c   : > { %p1662_p4 = por %p1661_p9, %p1660_p7 }
 0x31d   : > { %p1658_p5 = pneg %p1657_p0 }
 0x31e   : > { %p1664_p2 = por %p1663_p10, %p1662_p4 }
 0x320   : > { %p1665_p3 = pnand %p1664_p2, %p1658_p5 }
 0x322   : > { %1668 = shalt.err (!%p1665_p3)
}
 0x323   : > { %s1779_s25 = smov 128   ;;  %s1780_s14 = smov 8  }
 0x324   : > { %1471 = dma.vmem_to_hbm [thread:$0]  (%p2256_p1), %s2149_s23, 2048, %s2146_s15, %s2153_s18, %s1779_s25, %s1779_s25, %s1780_s14  }
 0x325 PF: > { %s2257_s20 = sld [smem:[#allocation11_spill]]  ;;  %s2258_s8 = sld [smem:[#allocation19_spill]] }
 0x326   : > { %p1483_p6 = scmp.ge.s32.totalorder %s1771_s29, 2 }
 0x32b   : > { %s1150_s17 = sand.u32 1, %s2257_s20   ;;  %p2259_p8 = scmp.ne.s32.totalorder %s2258_s8, 0 }
 0x32c   : > { %s1151_s12 = scalar_lea.sflag [#allocation7], %s1150_s17 }
 0x32d   : > { %p1478_p11 = pnand %p1483_p6, %p2259_p8 }
 0x32f   : > { %1722 = dma.done.wait (!%p1478_p11), %s1151_s12, 2048  }
 0x330   : > { %1724 = vsyncadd (!%p1478_p11), %s1151_s12, 4294965248  ;;  %s19_s29 = sadd.s32 1, %s1771_s29   ;;  %s2260_s13 = sld [smem:[#allocation12_spill]] }
 0x331   : > { %p16_p12 = scmp.ge.s32.totalorder %s19_s29, 10   ;;  %s2261_s20 = sld [smem:[#allocation18_spill]] }
 0x332   : > { %s2262_s7 = sld [smem:[#allocation17_spill]]  ;;  %s2263_s25 = sld [smem:[#allocation13_spill]] }
 0x333   : > { %s2264_s15 = sld [smem:[#allocation14_spill]]  ;;  %s2265_s28 = sld [smem:[#allocation15_spill]] }
 0x334   : > { %s2266_s30 = sld [smem:[#allocation16_spill]]  ;;  %s2267_s18 = smov %s1731_s19 }
 0x335   : > { %s2269_s21 = smov %s1743_s22  ;;  %s2271_s23 = smov %s1759_s26 }
 0x336   : > { %s2268_s19 = smov %s2260_s13  ;;  %s2272_s24 = smov %s1763_s27 }
 0x337   :  { %18 = sbr.rel (!%p16_p12) target bundleno = 10 (0xa), region = 140 }
 0x338   : > { %s2270_s22 = smov %s2262_s7 }
 0x339   : > { %s2273_s26 = smov %s2264_s15  ;;  %s2274_s27 = smov %s2265_s28 }
 0x33a   : > { %s2275_s28 = smov %s2266_s30 }
 0x33e   :  { %1156 = vsyncpa [#allocation6], 1 }
 0x33f   :  { %1158 = vsyncpa [#allocation6 + $0x1], 1 }
 0x340   :  { %1159 = vsyncpa [#allocation7], 1 }
 0x341   :  { %1161 = vsyncpa [#allocation7 + $0x1], 1 }

</bundles_post_ra>
